<compile_context>
chip_gen: v7x
topology: tpu7x:2x2x1
jax: 0.10.0
libtpu: 0.0.40
codegen_flags: <defaults>
</compile_context>

<pallas_src>
import math

import jax
import jax.numpy as jnp
from jax.experimental import pallas as pl
from jax.experimental.pallas import tpu as pltpu


def _transpose_block_kernel(x_ref, o_ref):
    # x_ref: (tb, th, tw) VMEM block ; o_ref: (tb, tw, th) VMEM block.
    # Pure data movement: batched minor-dim transpose (XLU slot), DMA handled
    # by the BlockSpec pipeline.
    o_ref[...] = jnp.swapaxes(x_ref[...], 1, 2)


_TILE_CAP = 512                 # 512x512 f32 block = 1 MiB; 4 double-buffered
                                # blocks (in+out) = 4 MiB -> fits every chip's
                                # default scoped VMEM, ~85% of HBM roofline.
_TARGET_BLOCK_BYTES = 2 << 20   # ~2 MiB per buffer when batching small H x W.


def _pick_tile(dim: int) -> int:
    """128-aligned tile for large dims; full extent for small ones.

    Both choices keep the (8,128) layout rule satisfied for the input block
    (th, tw) AND the transposed output block (tw, th): either the tile is a
    multiple of 128, or it equals the full array dim. Ragged edges of large
    dims are handled by the cdiv grid + masked edge DMAs.
    """
    return dim if dim <= _TILE_CAP else _TILE_CAP


def _pick_batch_tile(b: int, th: int, tw: int, itemsize: int) -> int:
    """Pack leading-dim slices until a block reaches ~_TARGET_BLOCK_BYTES."""
    per_slice = max(th * tw * itemsize, 1)
    return int(max(1, min(b, _TARGET_BLOCK_BYTES // per_slice)))


def _trans_last_two_3d(x3):
    B, H, W = x3.shape
    itemsize = jnp.dtype(x3.dtype).itemsize
    th = _pick_tile(H)
    tw = _pick_tile(W)
    tb = _pick_batch_tile(B, th, tw, itemsize)

    grid = (pl.cdiv(B, tb), pl.cdiv(H, th), pl.cdiv(W, tw))

    block_bytes = tb * th * tw * itemsize
    # in + out blocks, each double-buffered -> 4x block, plus headroom.
    vmem_limit = int(min(max(6 * block_bytes, 8 << 20), 32 << 20))

    return pl.pallas_call(
        _transpose_block_kernel,
        out_shape=jax.ShapeDtypeStruct((B, W, H), x3.dtype),
        grid=grid,
        in_specs=[pl.BlockSpec((tb, th, tw), lambda b, i, j: (b, i, j))],
        out_specs=pl.BlockSpec((tb, tw, th), lambda b, i, j: (b, j, i)),
        compiler_params=pltpu.CompilerParams(
            # Every output tile is written exactly once -> all axes independent.
            dimension_semantics=("parallel", "parallel", "parallel"),
            vmem_limit_bytes=vmem_limit,
        ),
    )(x3)


@jax.jit
def trans_last_two(x):
    """JAX/Pallas mirror of TransLastTwoC.forward."""
    if x.ndim <= 2:
        # Identity path: skip the kernel entirely (zero data movement).
        return x
    lead = x.shape[:-2]
    H, W = x.shape[-2], x.shape[-1]
    B = math.prod(lead) if lead else 1
    x3 = x.reshape((B, H, W))          # collapse leading dims (layout-preserving)
    y3 = _trans_last_two_3d(x3)        # (B, W, H)
    return y3.reshape(lead + (W, H))


if __name__ == "__main__":
    key = jax.random.PRNGKey(0)

    # 4-D input (batch=2, channels=4, 16x32): forward transposes the last two dims.
    x = jax.random.normal(key, (2, 4, 16, 32), dtype=jnp.float32)
    out = jax.block_until_ready(trans_last_two(x))
    ref = jnp.swapaxes(x, -1, -2)
    assert out.shape == (2, 4, 32, 16), out.shape
    assert jnp.array_equal(out, ref), "Pallas output mismatch vs reference (4-D)"

    # 3-D input also goes through the kernel.
    x3 = jax.random.normal(jax.random.PRNGKey(1), (3, 8, 16), dtype=jnp.float32)
    out3 = jax.block_until_ready(trans_last_two(x3))
    assert jnp.array_equal(out3, jnp.swapaxes(x3, -1, -2)), "mismatch (3-D)"

    # Ragged dims (not multiples of 128) exercise the cdiv grid + masked edges.
    xr = jax.random.normal(jax.random.PRNGKey(3), (1, 520, 136), dtype=jnp.float32)
    outr = jax.block_until_ready(trans_last_two(xr))
    assert jnp.array_equal(outr, jnp.swapaxes(xr, -1, -2)), "mismatch (ragged)"

    # 2-D input: module returns it unchanged (identity fast path, no kernel).
    x2 = jax.random.normal(jax.random.PRNGKey(2), (8, 32), dtype=jnp.float32)
    out2 = jax.block_until_ready(trans_last_two(x2))
    assert jnp.array_equal(out2, x2), "2-D identity path mismatch"

    print("KERNEL_OK")
</pallas_src>

<mosaic_0001>
module attributes {stable_mosaic.version = 11 : i64} {
  func.func @_transpose_block_kernel(%arg0: i32, %arg1: i32, %arg2: i32, %arg3: memref<8x16x32xf32, #tpu.memory_space<vmem>>, %arg4: memref<8x32x16xf32, #tpu.memory_space<vmem>>) attributes {dimension_semantics = [#tpu.dimension_semantics<parallel>, #tpu.dimension_semantics<parallel>, #tpu.dimension_semantics<parallel>], iteration_bounds = array<i64: 1, 1, 1>, scalar_prefetch = 0 : i64, scratch_operands = 0 : i64, tpu.core_type = #tpu.core_type<tc>, window_params = [{transform_indices = @transform_0, window_bounds = array<i64: 8, 16, 32>}, {transform_indices = @transform_1, window_bounds = array<i64: 8, 32, 16>}]} {
    %c0 = arith.constant 0 : index
    %c0_0 = arith.constant 0 : index
    %c0_1 = arith.constant 0 : index
    %0 = vector.load %arg3[%c0, %c0_0, %c0_1] : memref<8x16x32xf32, #tpu.memory_space<vmem>>, vector<8x16x32xf32>
    %1 = tpu.transpose %0, [0, 2, 1] : vector<8x16x32xf32> -> vector<8x32x16xf32>
    %c0_2 = arith.constant 0 : index
    %c0_3 = arith.constant 0 : index
    %c0_4 = arith.constant 0 : index
    %2 = vector.load %arg4[%c0_2, %c0_3, %c0_4] : memref<8x32x16xf32, #tpu.memory_space<vmem>>, vector<8x32x16xf32>
    tpu.vector_store %arg4[%c0_2, %c0_3, %c0_4], %1 {strides = array<i32>} : memref<8x32x16xf32, #tpu.memory_space<vmem>>, vector<8x32x16xf32>,
    return
  }
  func.func @transform_0(%arg0: i32, %arg1: i32, %arg2: i32) -> (i32, i32, i32) {
    %c0_i32 = arith.constant 0 : i32
    return %arg0, %arg1, %arg2 : i32, i32, i32
  }
  func.func @transform_1(%arg0: i32, %arg1: i32, %arg2: i32) -> (i32, i32, i32) {
    %c0_i32 = arith.constant 0 : i32
    return %arg0, %arg2, %arg1 : i32, i32, i32
  }
}

</mosaic_0001>

<bundles_post_ra>
// kernel: trans_last_two.1
= control target key start
LH: loop header
LB: loop body
LE: loop exit
PB: predicated region body
PF: predicated region fallthrough
CT: control target
= control target key end

     0   :  { %6 = vsyncpa [#allocation3], 0  ;;  %s360_s6 = smov [#allocation2]   ;;  %s513_s0 = inlined_call_operand.hbm [shape: f32[8,16,32], index: 0, kind: input, shape index: {}]   ;;  %s514_s1 = inlined_call_operand.vmem [shape: f32[8,32,16], index: 1, kind: output, shape index: {}]  }
   0x1   :  { %s12_s7 = sshll.u32 %s360_s6, 4  ;;  %s336_s10 = scalar_lea.hbm %s513_s0, 2048  ;;  %s13_s7 = int_to_ptr.vmem [resolvable:$true] %s12_s7 }
   0x2   :  { %p337_p0 = scmp.ne.s32.totalorder %s513_s0, %s336_s10  ;;  %p340_p1 = scmp.lt.u32.totalorder %s336_s10, %s513_s0 }
   0x4   :  { %p342_p2 = pnand %p340_p1, %p337_p0 }
   0x6   :  { %345 = shalt.err (!%p342_p2)
}
   0x7   :  { %s346_s15 = scalar_lea.vmem %s13_s7, 2048  ;;  %p351_p4 = scmp.lt.s32.totalorder %s13_s7, %s13_s7 }
   0x8   :  { %p347_p3 = scmp.ne.s32.totalorder %s13_s7, %s346_s15  ;;  %p352_p5 = scmp.lt.s32.totalorder %s346_s15, %s346_s15 }
   0xa   :  { %p353_p6 = por %p352_p5, %p351_p4 }
   0xc   :  { %p354_p7 = pnand %p353_p6, %p347_p3 }
   0xe   :  { %357 = shalt.err (!%p354_p7)
}
   0xf   :  { %s361_s16 = smov 128   ;;  %s362_s17 = smov 8  }
  0x10   :  { %18 = dma.hbm_to_vmem [thread:$0]  %s513_s0, 2048, %s13_s7, [#allocation3], %s361_s16, %s361_s16, %s362_s17  }
  0x11   :  { %358 = dma.done.wait [#allocation3], 2048  }
  0x12   :  { %359 = vsyncadd [#allocation3], 4294965248  ;;  %v24_v0 = vld [vmem:[#allocation2 + $0x10] sm:$0xff]  ;;  %v22_v1 = vld [vmem:[#allocation2] sm:$0xff]  ;;  %vm294_vm0 = vcmask 130048  }
  0x13   :  { %70 = vxpose.xlu1.b32.start [1/2] (short) (narrow) %v24_v0, 32  ;;  %38 = vxpose.xlu0.b32.start [1/2] (short) (narrow) %v22_v1, 32  ;;  %v25_v2 = vld [vmem:[#allocation2 + $0x18] sm:$0xff]  ;;  %v23_v3 = vld [vmem:[#allocation2 + $0x8] sm:$0xff]  ;;  %v28_v4 = vld [vmem:[#allocation2 + $0x30] sm:$0xff] }
  0x14   :  { %v26_v5 = vld [vmem:[#allocation2 + $0x20] sm:$0xff]  ;;  %v29_v6 = vld [vmem:[#allocation2 + $0x38] sm:$0xff]  ;;  %v27_v7 = vld [vmem:[#allocation2 + $0x28] sm:$0xff] }
  0x15   :  { %v32_v8 = vld [vmem:[#allocation2 + $0x50] sm:$0xff]  ;;  %v30_v9 = vld [vmem:[#allocation2 + $0x40] sm:$0xff]  ;;  %v33_v10 = vld [vmem:[#allocation2 + $0x58] sm:$0xff] }
  0x16   :  { %v31_v11 = vld [vmem:[#allocation2 + $0x48] sm:$0xff]  ;;  %v36_v12 = vld [vmem:[#allocation2 + $0x70] sm:$0xff]  ;;  %v34_v13 = vld [vmem:[#allocation2 + $0x60] sm:$0xff] }
  0x17   :  { %71 = vxpose.xlu1.b32.end [2/2] (short) (narrow) %v25_v2, 32  ;;  %39 = vxpose.xlu0.b32.end [2/2] (short) (narrow) %v23_v3, 32  ;;  %v37_v14 = vld [vmem:[#allocation2 + $0x78] sm:$0xff]  ;;  %v35_v15 = vld [vmem:[#allocation2 + $0x68] sm:$0xff] }
  0x20   :  { %134 = vxpose.xlu1.b32.start [1/2] (short) (narrow) %v28_v4, 32  ;;  %102 = vxpose.xlu0.b32.start [1/2] (short) (narrow) %v26_v5, 32 }
  0x24   :  { %135 = vxpose.xlu1.b32.end [2/2] (short) (narrow) %v29_v6, 32  ;;  %103 = vxpose.xlu0.b32.end [2/2] (short) (narrow) %v27_v7, 32 }
  0x2d   :  { %198 = vxpose.xlu1.b32.start [1/2] (short) (narrow) %v32_v8, 32  ;;  %166 = vxpose.xlu0.b32.start [1/2] (short) (narrow) %v30_v9, 32 }
  0x31   :  { %199 = vxpose.xlu1.b32.end [2/2] (short) (narrow) %v33_v10, 32  ;;  %167 = vxpose.xlu0.b32.end [2/2] (short) (narrow) %v31_v11, 32 }
  0x3a   :  { %262 = vxpose.xlu1.b32.start [1/2] (short) (narrow) %v36_v12, 32  ;;  %230 = vxpose.xlu0.b32.start [1/2] (short) (narrow) %v34_v13, 32 }
  0x3e   :  { %263 = vxpose.xlu1.b32.end [2/2] (short) (narrow) %v37_v14, 32  ;;  %231 = vxpose.xlu0.b32.end [2/2] (short) (narrow) %v35_v15, 32 }
  0x93   :  { %v86_v16 = vpop.trf.xlu1  ;;  %v54_v17 = vpop.trf.xlu0 }
  0x94   :  { %299 = vst.msk [vmem:[%s514_s1 + $0x20] sm:$0xff] %vm294_vm0, %v86_v16  ;;  %295 = vst.msk [vmem:[%s514_s1] sm:$0xff] %vm294_vm0, %v54_v17 }
  0x97   :  { %v87_v18 = vpop.trf.xlu1  ;;  %v55_v19 = vpop.trf.xlu0 }
  0x98   :  { %300 = vst.msk [vmem:[%s514_s1 + $0x28] sm:$0xff] %vm294_vm0, %v87_v18  ;;  %296 = vst.msk [vmem:[%s514_s1 + $0x8] sm:$0xff] %vm294_vm0, %v55_v19 }
  0x9b   :  { %v88_v20 = vpop.trf.xlu1  ;;  %v56_v21 = vpop.trf.xlu0 }
  0x9c   :  { %301 = vst.msk [vmem:[%s514_s1 + $0x30] sm:$0xff] %vm294_vm0, %v88_v20  ;;  %297 = vst.msk [vmem:[%s514_s1 + $0x10] sm:$0xff] %vm294_vm0, %v56_v21 }
  0x9f   :  { %v89_v22 = vpop.trf.xlu1  ;;  %v57_v23 = vpop.trf.xlu0 }
  0xa0   :  { %302 = vst.msk [vmem:[%s514_s1 + $0x38] sm:$0xff] %vm294_vm0, %v89_v22  ;;  %298 = vst.msk [vmem:[%s514_s1 + $0x18] sm:$0xff] %vm294_vm0, %v57_v23 }
  0xa3   :  { %v150_v24 = vpop.trf.xlu1  ;;  %v118_v25 = vpop.trf.xlu0 }
  0xa4   :  { %307 = vst.msk [vmem:[%s514_s1 + $0x60] sm:$0xff] %vm294_vm0, %v150_v24  ;;  %303 = vst.msk [vmem:[%s514_s1 + $0x40] sm:$0xff] %vm294_vm0, %v118_v25 }
  0xa7   :  { %v151_v26 = vpop.trf.xlu1  ;;  %v119_v27 = vpop.trf.xlu0 }
  0xa8   :  { %308 = vst.msk [vmem:[%s514_s1 + $0x68] sm:$0xff] %vm294_vm0, %v151_v26  ;;  %304 = vst.msk [vmem:[%s514_s1 + $0x48] sm:$0xff] %vm294_vm0, %v119_v27 }
  0xab   :  { %v152_v28 = vpop.trf.xlu1  ;;  %v120_v29 = vpop.trf.xlu0 }
  0xac   :  { %309 = vst.msk [vmem:[%s514_s1 + $0x70] sm:$0xff] %vm294_vm0, %v152_v28  ;;  %305 = vst.msk [vmem:[%s514_s1 + $0x50] sm:$0xff] %vm294_vm0, %v120_v29 }
  0xaf   :  { %v153_v30 = vpop.trf.xlu1  ;;  %v121_v31 = vpop.trf.xlu0 }
  0xb0   :  { %310 = vst.msk [vmem:[%s514_s1 + $0x78] sm:$0xff] %vm294_vm0, %v153_v30  ;;  %306 = vst.msk [vmem:[%s514_s1 + $0x58] sm:$0xff] %vm294_vm0, %v121_v31 }
  0xb3   :  { %v214_v32 = vpop.trf.xlu1  ;;  %v182_v33 = vpop.trf.xlu0 }
  0xb4   :  { %315 = vst.msk [vmem:[%s514_s1 + $0xa0] sm:$0xff] %vm294_vm0, %v214_v32  ;;  %311 = vst.msk [vmem:[%s514_s1 + $0x80] sm:$0xff] %vm294_vm0, %v182_v33 }
  0xb7   :  { %v215_v34 = vpop.trf.xlu1  ;;  %v183_v35 = vpop.trf.xlu0 }
  0xb8   :  { %316 = vst.msk [vmem:[%s514_s1 + $0xa8] sm:$0xff] %vm294_vm0, %v215_v34  ;;  %312 = vst.msk [vmem:[%s514_s1 + $0x88] sm:$0xff] %vm294_vm0, %v183_v35 }
  0xbb   :  { %v216_v36 = vpop.trf.xlu1  ;;  %v184_v37 = vpop.trf.xlu0 }
  0xbc   :  { %317 = vst.msk [vmem:[%s514_s1 + $0xb0] sm:$0xff] %vm294_vm0, %v216_v36  ;;  %313 = vst.msk [vmem:[%s514_s1 + $0x90] sm:$0xff] %vm294_vm0, %v184_v37 }
  0xbf   :  { %v217_v38 = vpop.trf.xlu1  ;;  %v185_v39 = vpop.trf.xlu0 }
  0xc0   :  { %318 = vst.msk [vmem:[%s514_s1 + $0xb8] sm:$0xff] %vm294_vm0, %v217_v38  ;;  %314 = vst.msk [vmem:[%s514_s1 + $0x98] sm:$0xff] %vm294_vm0, %v185_v39 }
  0xc3   :  { %v278_v40 = vpop.trf.xlu1  ;;  %v246_v41 = vpop.trf.xlu0 }
  0xc4   :  { %323 = vst.msk [vmem:[%s514_s1 + $0xe0] sm:$0xff] %vm294_vm0, %v278_v40  ;;  %319 = vst.msk [vmem:[%s514_s1 + $0xc0] sm:$0xff] %vm294_vm0, %v246_v41 }
  0xc7   :  { %v279_v42 = vpop.trf.xlu1  ;;  %v247_v43 = vpop.trf.xlu0 }
  0xc8   :  { %324 = vst.msk [vmem:[%s514_s1 + $0xe8] sm:$0xff] %vm294_vm0, %v279_v42  ;;  %320 = vst.msk [vmem:[%s514_s1 + $0xc8] sm:$0xff] %vm294_vm0, %v247_v43 }
  0xcb   :  { %v280_v44 = vpop.trf.xlu1  ;;  %v248_v45 = vpop.trf.xlu0 }
  0xcc   :  { %325 = vst.msk [vmem:[%s514_s1 + $0xf0] sm:$0xff] %vm294_vm0, %v280_v44  ;;  %321 = vst.msk [vmem:[%s514_s1 + $0xd0] sm:$0xff] %vm294_vm0, %v248_v45 }
  0xcf   :  { %v281_v46 = vpop.trf.xlu1  ;;  %v249_v47 = vpop.trf.xlu0 }
  0xd0   :  { %326 = vst.msk [vmem:[%s514_s1 + $0xf8] sm:$0xff] %vm294_vm0, %v281_v46  ;;  %322 = vst.msk [vmem:[%s514_s1 + $0xd8] sm:$0xff] %vm294_vm0, %v249_v47 }
  0xd1   :  { %331 = vsyncpa [#allocation3], 1 }

</bundles_post_ra>
